<compile_context>
chip_gen: v6e
topology: v6e:2x2x1
jax: 0.10.0
libtpu: 0.0.40
codegen_flags: <defaults>
</compile_context>

<pallas_src>
import numpy as np
import jax
import jax.numpy as jnp
from jax.experimental import pallas as pl
from jax.experimental.pallas import tpu as pltpu


# ----------------------------- Pallas kernel -------------------------------

def _fused_conv_kernel(x_ref, w_ref, b_ref, o_ref):
    # x_ref: (1, Hp, Wp*Cin)     bf16  padded NHWC image, (w, cin) in lanes
    # w_ref: (KH, Wp*Cin, W*Cout) bf16  width-banded weights, one per kh tap
    # b_ref: (1, W*Cout)          f32   bias tiled across W
    # o_ref: (1, H, W*Cout)       f32   NHWC rows, (w, cout) in lanes (dense)
    h_out = o_ref.shape[1]
    x = x_ref[0]                                    # (Hp, Wp*Cin)
    acc = jnp.zeros(o_ref.shape[1:], jnp.float32)   # (H, W*Cout) f32 accumulator
    for kh in range(w_ref.shape[0]):                # static unroll, KH = 3
        acc += jnp.dot(x[kh:kh + h_out, :], w_ref[kh],
                       preferred_element_type=jnp.float32)
    acc = acc + b_ref[...]                          # f32 bias, broadcast over rows
    o_ref[0] = jnp.maximum(acc, 0.0)                # ReLU in f32, lane-dense store


def fused_conv3x3_bias_relu(xp_flat_bf16, w_banded_bf16, b_row_f32, *, h_out):
    """xp_flat: (N, Hp, Wp*Cin) bf16, w_banded: (KH, Wp*Cin, W*Cout) bf16,
    b_row: (1, W*Cout) f32  ->  (N, H, W*Cout) f32."""
    n, hp, k_in = xp_flat_bf16.shape
    kh, _, n_out = w_banded_bf16.shape

    flops = 2 * n * kh * h_out * k_in * n_out
    bytes_accessed = (xp_flat_bf16.size * 2 + w_banded_bf16.size * 2
                      + b_row_f32.size * 4 + n * h_out * n_out * 4)

    return pl.pallas_call(
        _fused_conv_kernel,
        out_shape=jax.ShapeDtypeStruct((n, h_out, n_out), jnp.float32),
        grid_spec=pltpu.PrefetchScalarGridSpec(
            num_scalar_prefetch=0,
            grid=(n,),
            in_specs=[
                # per-image padded activation rows
                pl.BlockSpec((1, hp, k_in), lambda i: (i, 0, 0)),
                # grid-invariant banded weights / bias (DMA'd once)
                pl.BlockSpec((kh, k_in, n_out), lambda i: (0, 0, 0)),
                pl.BlockSpec((1, n_out), lambda i: (0, 0)),
            ],
            out_specs=pl.BlockSpec((1, h_out, n_out), lambda i: (i, 0, 0)),
        ),
        compiler_params=pltpu.CompilerParams(
            dimension_semantics=("parallel",),
            # explicit budget; footprint here is ~130 KB, well under the
            # 64 MiB physical VMEM of v7x (128 MiB on v5e/v6e).
            vmem_limit_bytes=16 * 1024 * 1024,
        ),
        cost_estimate=pl.CostEstimate(flops=flops, transcendentals=0,
                                      bytes_accessed=bytes_accessed),
    )(xp_flat_bf16, w_banded_bf16, b_row_f32)


# ------------------------ jitted engine forward pass -------------------------

@jax.jit
def _engine_forward(x_nchw, banded_bf16, b_row_f32):
    n, cin, h, w = x_nchw.shape
    cout = b_row_f32.shape[1] // w
    # NCHW -> NHWC once at the true module boundary (TRT/PyTorch convention).
    x_nhwc = jnp.transpose(x_nchw, (0, 2, 3, 1))
    # 1-pixel 'same' halo, flatten (w, cin) into lanes, cast to bf16.
    xp = jnp.pad(x_nhwc, ((0, 0), (1, 1), (1, 1), (0, 0)))
    xp = xp.reshape(n, h + 2, (w + 2) * cin).astype(jnp.bfloat16)
    y = fused_conv3x3_bias_relu(xp, banded_bf16, b_row_f32, h_out=h)
    y = y.reshape(n, h, w, cout)
    return jnp.transpose(y, (0, 3, 1, 2))           # back to NCHW


# --------------------------- synthetic "engine" -----------------------------

class SyntheticConvEngine:
    """Deterministic stand-in for a TensorRT engine: conv3x3('same')+bias+ReLU."""

    KH = 3
    KW = 3

    def __init__(self, cin, cout, key):
        kw_key, kb_key = jax.random.split(key)
        self.cin = cin
        self.cout = cout
        # per-tap weights (kh, kw, cin, cout); f32 master copy
        self.w_taps = (jax.random.normal(
            kw_key, (self.KH, self.KW, cin, cout), jnp.float32)
            * (1.0 / np.sqrt(self.KH * self.KW * cin)))
        self.bias = jax.random.normal(kb_key, (cout,), jnp.float32) * 0.1
        self._binding_names = ["input_0", "output_0"]
        self._banded_cache = {}

    # --- engine/binding introspection (mirrors trt.ICudaEngine surface) ---
    def get_binding_index(self, name):
        return self._binding_names.index(name)

    def get_binding_dtype(self, idx):
        return jnp.float32

    def output_shape(self, input_shape):
        n, c, h, w = input_shape
        return (n, self.cout, h, w)

    # --- width-banded (Toeplitz) weight build: one-time, host-side ---
    def _banded_weights(self, w):
        if w in self._banded_cache:
            return self._banded_cache[w]
        wp = w + self.KW - 1
        taps = np.asarray(self.w_taps)                      # (KH,KW,Cin,Cout)
        banded = np.zeros((self.KH, wp * self.cin, w * self.cout), np.float32)
        for kh in range(self.KH):
            for kw in range(self.KW):
                for x in range(w):
                    r0 = (x + kw) * self.cin
                    c0 = x * self.cout
                    banded[kh, r0:r0 + self.cin, c0:c0 + self.cout] = taps[kh, kw]
        banded_bf16 = jnp.asarray(banded, jnp.bfloat16)
        b_row = jnp.asarray(np.tile(np.asarray(self.bias), w)[None, :],
                            jnp.float32)                    # (1, W*Cout)
        self._banded_cache[w] = (banded_bf16, b_row)
        return self._banded_cache[w]

    # --- execution: fused Pallas hot path ---
    def execute(self, x_nchw):
        n, c, h, w = x_nchw.shape
        banded_bf16, b_row = self._banded_weights(w)
        return _engine_forward(x_nchw, banded_bf16, b_row)


# ------------------------------ TRTModule -----------------------------------

class TRTModulePallas:
    """Mirrors TRTModule.forward(): name->binding dispatch, output allocation
    via engine-declared shapes/dtypes, single-output unwrap."""

    def __init__(self, engine=None, input_names=None, output_names=None):
        self.engine = engine
        self.input_names = input_names
        self.output_names = output_names

    def __call__(self, *inputs):
        bindings = [None] * (len(self.input_names) + len(self.output_names))
        for i, input_name in enumerate(self.input_names):
            idx = self.engine.get_binding_index(input_name)
            bindings[idx] = inputs[i]

        outputs = [None] * len(self.output_names)
        for i, output_name in enumerate(self.output_names):
            idx = self.engine.get_binding_index(output_name)
            dtype = self.engine.get_binding_dtype(idx)
            # "execute": synthetic engine maps input_0 -> output_0
            x = bindings[self.engine.get_binding_index(self.input_names[0])]
            out = self.engine.execute(x).astype(dtype)
            outputs[i] = out
            bindings[idx] = out

        outputs = tuple(outputs)
        if len(outputs) == 1:
            outputs = outputs[0]
        return outputs


# -------------------------------- main ---------------------------------------

if __name__ == "__main__":
    key = jax.random.PRNGKey(0)
    k_x, k_eng = jax.random.split(key)

    N, C_IN, H, W = 2, 4, 16, 16
    C_OUT = 8

    x = jax.random.normal(k_x, (N, C_IN, H, W), jnp.float32)   # NCHW input

    engine = SyntheticConvEngine(C_IN, C_OUT, k_eng)
    module = TRTModulePallas(engine=engine,
                             input_names=["input_0"],
                             output_names=["output_0"])

    y = module(x)
    y = jax.block_until_ready(y)

    # reference in plain JAX with the SAME bf16 operands, f32 accumulate
    x_nhwc = jnp.transpose(x, (0, 2, 3, 1))
    xp_ref = jnp.pad(x_nhwc, ((0, 0), (1, 1), (1, 1), (0, 0))).astype(jnp.bfloat16)
    w_bf16 = engine.w_taps.astype(jnp.bfloat16)
    ref = jnp.zeros((N, H, W, C_OUT), jnp.float32)
    for kh in range(3):
        for kw in range(3):
            ref = ref + jnp.einsum(
                "nhwc,co->nhwo",
                xp_ref[:, kh:kh + H, kw:kw + W, :], w_bf16[kh, kw],
                preferred_element_type=jnp.float32)
    ref = jnp.maximum(ref + engine.bias[None, None, None, :], 0.0)
    ref = jnp.transpose(ref, (0, 3, 1, 2))

    assert y.shape == (N, C_OUT, H, W)
    np.testing.assert_allclose(np.asarray(y), np.asarray(ref),
                               rtol=1e-5, atol=1e-4)
    print("KERNEL_OK")
</pallas_src>

<mosaic_0001>
module attributes {stable_mosaic.version = 11 : i64} {
  func.func @_fused_conv_kernel(%arg0: i32, %arg1: memref<1x18x72xbf16, #tpu.memory_space<vmem>>, %arg2: memref<3x72x128xbf16, #tpu.memory_space<vmem>>, %arg3: memref<1x128xf32, #tpu.memory_space<vmem>>, %arg4: memref<1x16x128xf32, #tpu.memory_space<vmem>>) attributes {dimension_semantics = [#tpu.dimension_semantics<parallel>], iteration_bounds = array<i64: 2>, scalar_prefetch = 0 : i64, scratch_operands = 0 : i64, tpu.core_type = #tpu.core_type<tc>, window_params = [{transform_indices = @transform_0, window_bounds = array<i64: 1, 18, 72>}, {pipeline_mode = #tpu.pipeline_mode<synchronous>, transform_indices = @transform_1, window_bounds = array<i64: 3, 72, 128>}, {pipeline_mode = #tpu.pipeline_mode<synchronous>, transform_indices = @transform_2, window_bounds = array<i64: 1, 128>}, {transform_indices = @transform_3, window_bounds = array<i64: 1, 16, 128>}]} {
    %c0 = arith.constant 0 : index
    %c0_0 = arith.constant 0 : index
    %c0_1 = arith.constant 0 : index
    %0 = vector.load %arg1[%c0, %c0_0, %c0_1] : memref<1x18x72xbf16, #tpu.memory_space<vmem>>, vector<1x18x72xbf16>
    %1 = vector.shape_cast %0 : vector<1x18x72xbf16> to vector<18x72xbf16>
    %cst = arith.constant 0.000000e+00 : f32
    %2 = vector.broadcast %cst : f32 to vector<16x128xf32>
    %3 = vector.extract_strided_slice %1 {offsets = [0, 0], sizes = [16, 72], strides = [1, 1]} : vector<18x72xbf16> to vector<16x72xbf16>
    %c0_2 = arith.constant 0 : index
    %c0_3 = arith.constant 0 : index
    %c0_4 = arith.constant 0 : index
    %4 = vector.load %arg2[%c0_2, %c0_3, %c0_4] : memref<3x72x128xbf16, #tpu.memory_space<vmem>>, vector<1x72x128xbf16>
    %5 = vector.shape_cast %4 : vector<1x72x128xbf16> to vector<72x128xbf16>
    %cst_5 = arith.constant dense<0.000000e+00> : vector<16x128xf32>
    %6 = tpu.matmul %3, %5, %cst_5 {dimension_numbers = #tpu.dot_dimension_numbers<[1], [0], [0], [1], [0, 0, 1, 1], [], []>} : vector<16x72xbf16>, vector<72x128xbf16>, vector<16x128xf32> -> vector<16x128xf32>
    %7 = arith.addf %2, %6 : vector<16x128xf32>
    %8 = vector.extract_strided_slice %1 {offsets = [1, 0], sizes = [16, 72], strides = [1, 1]} : vector<18x72xbf16> to vector<16x72xbf16>
    %c1 = arith.constant 1 : index
    %c0_6 = arith.constant 0 : index
    %c0_7 = arith.constant 0 : index
    %9 = vector.load %arg2[%c1, %c0_6, %c0_7] : memref<3x72x128xbf16, #tpu.memory_space<vmem>>, vector<1x72x128xbf16>
    %10 = vector.shape_cast %9 : vector<1x72x128xbf16> to vector<72x128xbf16>
    %cst_8 = arith.constant dense<0.000000e+00> : vector<16x128xf32>
    %11 = tpu.matmul %8, %10, %cst_8 {dimension_numbers = #tpu.dot_dimension_numbers<[1], [0], [0], [1], [0, 0, 1, 1], [], []>} : vector<16x72xbf16>, vector<72x128xbf16>, vector<16x128xf32> -> vector<16x128xf32>
    %12 = arith.addf %7, %11 : vector<16x128xf32>
    %13 = vector.extract_strided_slice %1 {offsets = [2, 0], sizes = [16, 72], strides = [1, 1]} : vector<18x72xbf16> to vector<16x72xbf16>
    %c2 = arith.constant 2 : index
    %c0_9 = arith.constant 0 : index
    %c0_10 = arith.constant 0 : index
    %14 = vector.load %arg2[%c2, %c0_9, %c0_10] : memref<3x72x128xbf16, #tpu.memory_space<vmem>>, vector<1x72x128xbf16>
    %15 = vector.shape_cast %14 : vector<1x72x128xbf16> to vector<72x128xbf16>
    %cst_11 = arith.constant dense<0.000000e+00> : vector<16x128xf32>
    %16 = tpu.matmul %13, %15, %cst_11 {dimension_numbers = #tpu.dot_dimension_numbers<[1], [0], [0], [1], [0, 0, 1, 1], [], []>} : vector<16x72xbf16>, vector<72x128xbf16>, vector<16x128xf32> -> vector<16x128xf32>
    %17 = arith.addf %12, %16 : vector<16x128xf32>
    %c0_12 = arith.constant 0 : index
    %c0_13 = arith.constant 0 : index
    %18 = vector.load %arg3[%c0_12, %c0_13] : memref<1x128xf32, #tpu.memory_space<vmem>>, vector<1x128xf32>
    %19 = vector.broadcast %18 : vector<1x128xf32> to vector<16x128xf32>
    %20 = arith.addf %17, %19 : vector<16x128xf32>
    %cst_14 = arith.constant 0.000000e+00 : f32
    %21 = vector.broadcast %cst_14 : f32 to vector<16x128xf32>
    %22 = arith.maximumf %20, %21 : vector<16x128xf32>
    %c0_15 = arith.constant 0 : index
    %c0_16 = arith.constant 0 : index
    %c0_17 = arith.constant 0 : index
    %23 = vector.load %arg4[%c0_15, %c0_16, %c0_17] : memref<1x16x128xf32, #tpu.memory_space<vmem>>, vector<1x16x128xf32>
    %24 = vector.shape_cast %23 : vector<1x16x128xf32> to vector<16x128xf32>
    %25 = vector.shape_cast %22 : vector<16x128xf32> to vector<1x16x128xf32>
    tpu.vector_store %arg4[%c0_15, %c0_16, %c0_17], %25 {strides = array<i32>} : memref<1x16x128xf32, #tpu.memory_space<vmem>>, vector<1x16x128xf32>,
    return
  }
  func.func @transform_0(%arg0: i32) -> (i32, i32, i32) {
    %c0_i32 = arith.constant 0 : i32
    %c0_i32_0 = arith.constant 0 : i32
    %c0_i32_1 = arith.constant 0 : i32
    return %arg0, %c0_i32, %c0_i32_0 : i32, i32, i32
  }
  func.func @transform_1(%arg0: i32) -> (i32, i32, i32) {
    %c0_i32 = arith.constant 0 : i32
    %c0_i32_0 = arith.constant 0 : i32
    %c0_i32_1 = arith.constant 0 : i32
    %c0_i32_2 = arith.constant 0 : i32
    return %c0_i32, %c0_i32_0, %c0_i32_1 : i32, i32, i32
  }
  func.func @transform_2(%arg0: i32) -> (i32, i32) {
    %c0_i32 = arith.constant 0 : i32
    %c0_i32_0 = arith.constant 0 : i32
    %c0_i32_1 = arith.constant 0 : i32
    return %c0_i32, %c0_i32_0 : i32, i32
  }
  func.func @transform_3(%arg0: i32) -> (i32, i32, i32) {
    %c0_i32 = arith.constant 0 : i32
    %c0_i32_0 = arith.constant 0 : i32
    %c0_i32_1 = arith.constant 0 : i32
    return %arg0, %c0_i32, %c0_i32_0 : i32, i32, i32
  }
}

</mosaic_0001>

<bundles_post_ra>
// kernel: _engine_forward.1
= control target key start
LH: loop header
LB: loop body
LE: loop exit
PB: predicated region body
PF: predicated region fallthrough
CT: control target
= control target key end

     0   :  { %s690_s12 = smov 0   ;;  %s786_s0 = inlined_call_operand.vmem [shape: bf16[2,18,72], index: 0, kind: input, shape index: {}]   ;;  %s787_s1 = inlined_call_operand.vmem [shape: bf16[3,72,128], index: 1, kind: input, shape index: {}]   ;;  %s788_s2 = inlined_call_operand.vmem [shape: f32[1,128], index: 2, kind: input, shape index: {}]   ;;  %s789_s3 = inlined_call_operand.vmem [shape: f32[2,16,128], index: 3, kind: output, shape index: {}]  }
   0x1 LB: > { %s522_s13 = sadd.s32 4294967295, %s666_s12   ;;  %p526_p0 = scmp.ge.s32.totalorder %s666_s12, 1  ;;  %s666_s12 = sphi %s690_s12, %s13_s12  }
   0x2   : > { %p137_p1 = scmp.lt.s32.totalorder %s666_s12, 3 }
   0x4   : > { %p138_p2 = pnand %p526_p0, %p137_p1 }
   0x5   : > { %p161_p3 = scmp.lt.s32.totalorder (!%p138_p2), %s522_s13, 1 }
   0x6   : > { %141 = sbr.rel (%p138_p2) target bundleno = 256 (0x100), region = 32 }
   0xb   : > { %v643_v0 = vld [vmem:[%s787_s1 + $0x44] ss:$0 sps:$4 sm:$0xff]   ;;  %vm246_vm0 = vcmask 1043456   ;;  %v668_v1 = vmov 0.0   ;;  %v644_v2 = vld [vmem:[%s787_s1 + $0x20] ss:$0 sps:$4 sm:$0xff]  }
   0xc   : > { %590 = vmatprep.subr.bf16.mxu0 %v668_v1  ;;  %604 = vmatprep.subr.bf16.mxu1 %v668_v1  ;;  %v248_v3 = vsel %vm246_vm0, %v643_v0, 0  ;;  %v321_v4 = vsel %vm246_vm0, %v644_v2, 0  ;;  %v645_v5 = vld [vmem:[%s787_s1 + $0x3c] sm:$0xff]   ;;  %vm669_vm1 = vmmov 0   ;;  %v647_v7 = vld [vmem:[%s787_s1 + $0x34] sm:$0xff]   ;;  %s791_s13 = smov (!%p161_p3, %s522_s13), 1 }
   0xd   : > { %591 = vmatpush3.bf16.msra.mxu0 %v248_v3  ;;  %605 = vmatpush3.bf16.msra.mxu1 %v321_v4  ;;  %v646_v6 = vld [vmem:[%s787_s1 + $0x18] sm:$0xff]   ;;  %v648_v8 = vld [vmem:[%s787_s1 + $0x10] sm:$0xff]   ;;  %s632_s26 = smul.u32 12, %s791_s13  ;;  %v650_v10 = vld [vmem:[%s787_s1 + $0x8] sm:$0xff]   ;;  %vm202_vm2 = vsmask.f32 7424 }
   0xe   : > { %592 = vmatprep.subr.bf16.mxu0 %v668_v1  ;;  %606 = vmatprep.subr.bf16.mxu1 %v668_v1  ;;  %v649_v9 = vld [vmem:[%s787_s1 + $0x2c] sm:$0xff]   ;;  %v651_v13 = vld [vmem:[%s787_s1 + $0x24] sm:$0xff]   ;;  %vm242_vm3 = vcmask 588800   ;;  %v657_v25 = vld [vmem:[%s787_s1 + $0x58] sm:$0xff]   ;;  %vm374_vm4 = vcmask 1046528   ;;  %s571_s25 = sshll.u32 %s791_s13, 4 }
   0xf   : > { %600 = vmatprep.mubr.msk.bf16.mxu0 %vm669_vm1, %v668_v1  ;;  %614 = vmatprep.mubr.msk.bf16.mxu1 %vm669_vm1, %v668_v1  ;;  %s165_s6 = scalar_lea.vmem %s786_s0, %s632_s26  ;;  %v652_v17 = vld [vmem:[%s787_s1] sm:$0xff]   ;;  %v655_v18 = vld [vmem:[%s787_s1 + $0x68] ss:$0 sps:$4 sm:$0xff]   ;;  %v658_v26 = vld [vmem:[%s787_s1 + $0x50] sm:$0xff]   ;;  %s170_s28 = scalar_lea.vmem %s789_s3, %s571_s25 }
  0x10   : > { %v653_v11 = vld [vmem:[%s165_s6] sm:$0xff]   ;;  %v654_v12 = vld [vmem:[%s165_s6 + $0x8] ss:$0 sps:$4 sm:$0x11]   ;;  %v409_v22 = vsel %vm246_vm0, %v655_v18, 0 }
  0x11   : > { %593 = vmatpush3.bf16.msra.mxu0 %v645_v5  ;;  %607 = vmatpush3.bf16.msra.mxu1 %v646_v6  ;;  %v204_v14 = vshrl.u32 %v653_v11, 16  ;;  %v206_v15 = vshll.u32 %v653_v11, 16  ;;  %v211_v16 = vshll.u32 %v654_v12, 16  ;;  %v656_v24 = vld [vmem:[%s787_s1 + $0x60] sm:$0xff]   ;;  %v659_v27 = vld [vmem:[%s787_s1 + $0x48] sm:$0xff]   ;;  %v375_v28 = vrot.slane %v653_v11, 1 }
  0x12   : > { %594 = vmatprep.subr.bf16.mxu0 %v668_v1  ;;  %608 = vmatprep.subr.bf16.mxu1 %v668_v1  ;;  %v376_v29 = vrot.slane %v654_v12, 1  ;;  %v568_v41 = vld [vmem:[%s788_s2] ss:$0 sm:$0xff] }
  0x13   : > { %v208_v19 = vrot.slane %v206_v15, 1  ;;  %v213_v20 = vrot.slane %v211_v16, 1 }
  0x14   : > { %v377_v30 = vsel %vm374_vm4, %v375_v28, %v376_v29 }
  0x15   : > { %595 = vmatpush3.bf16.msra.mxu0 %v647_v7  ;;  %609 = vmatpush3.bf16.msra.mxu1 %v648_v8  ;;  %v209_v21 = vor.u32 %v208_v19, %v204_v14 }
  0x16   : > { %596 = vmatprep.subr.bf16.mxu0 %v668_v1  ;;  %610 = vmatprep.subr.bf16.mxu1 %v668_v1 }
  0x17   : > { %v214_v23 = vsel %vm202_vm2, %v209_v21, %v213_v20 }
  0x19   : > { %597 = vmatpush3.bf16.msra.mxu0 %v649_v9  ;;  %611 = vmatpush3.bf16.msra.mxu1 %v650_v10 }
  0x1a   : > { %598 = vmatprep.subr.bf16.mxu0 %v668_v1  ;;  %612 = vmatprep.subr.bf16.mxu1 %v668_v1 }
  0x1d   : > { %599 = vmatpush3.bf16.msra.mxu0 %v651_v13  ;;  %613 = vmatpush3.bf16.msra.mxu1 %v652_v17 }
  0x1e   : > { %618 = vmatprep.subr.bf16.mxu0 %v668_v1 }
  0x20   : > { %601 = vmatmul.mubr.msk.bf16.vlgmr.msra.gmra.mxu0 %vm242_vm3, %v214_v23  ;;  %615 = vmatmul.mubr.msk.bf16.vlgmr.msra.gmra.mxu1 %vm242_vm3, %v653_v11 }
  0x21   : > { %619 = vmatpush3.bf16.msra.mxu0 %v409_v22  ;;  %628 = vmatprep.mubr.msk.bf16.mxu0 %vm669_vm1, %v668_v1 }
  0x22   : > { %620 = vmatprep.subr.bf16.mxu0 %v668_v1 }
  0x25   : > { %621 = vmatpush3.bf16.msra.mxu0 %v656_v24 }
  0x26   : > { %622 = vmatprep.subr.bf16.mxu0 %v668_v1 }
  0x29   : > { %623 = vmatpush3.bf16.msra.mxu0 %v657_v25 }
  0x2a   : > { %624 = vmatprep.subr.bf16.mxu0 %v668_v1 }
  0x2d   : > { %625 = vmatpush3.bf16.msra.mxu0 %v658_v26 }
  0x2e   : > { %626 = vmatprep.subr.bf16.mxu0 %v668_v1 }
  0x31   : > { %627 = vmatpush3.bf16.msra.mxu0 %v659_v27 }
  0x34   : > { %629 = vmatmul.mubr.msk.bf16.vlgmr.msra.gmra.mxu0 %vm242_vm3, %v377_v30 }
  0xe0   : > { %v284_v31 = vpop.f32.mrf.mxu0  ;;  %v357_v32 = vpop.f32.mrf.mxu1 }
  0xe1   : > { %v358_v39 = vadd.f32 %v357_v32, %v284_v31 }
  0xe2   : > { %v602_v33 = vpop.f32.mrf.mxu0  ;;  %v616_v34 = vpop.f32.mrf.mxu1 }
  0xe4   : > { %v287_v35 = vpop.f32.mrf.mxu0  ;;  %v360_v36 = vpop.f32.mrf.mxu1 }
  0xe5   : > { %v361_v44 = vadd.f32 %v360_v36, %v287_v35 }
  0xe6   : > { %v603_v37 = vpop.f32.mrf.mxu0  ;;  %v617_v38 = vpop.f32.mrf.mxu1 }
  0xf4   : > { %v445_v40 = vpop.f32.mrf.mxu0 }
  0xf5   : > { %v452_v42 = vadd.f32 %v445_v40, %v358_v39 }
  0xf6   : > { %v630_v43 = vpop.f32.mrf.mxu0 }
  0xf7   : > { %v461_v45 = vadd.f32 %v568_v41, %v452_v42 }
  0xf8   : > { %v448_v46 = vpop.f32.mrf.mxu0 }
  0xf9   : > { %v463_v47 = vmax.f32 %v461_v45, 0.0  ;;  %v453_v48 = vadd.f32 %v448_v46, %v361_v44 }
  0xfa   : > { %v631_v49 = vpop.f32.mrf.mxu0 }
  0xfb   : > { %465 = vst [vmem:[%s170_s28] sm:$0xff] %v463_v47  ;;  %v462_v50 = vadd.f32 %v568_v41, %v453_v48 }
  0xfd   : > { %v464_v51 = vmax.f32 %v462_v50, 0.0 }
  0xff   : > { %466 = vst [vmem:[%s170_s28 + $0x8] sm:$0xff] %v464_v51 }
 0x100 PF: > { %s13_s12 = sadd.s32 1, %s666_s12  }
 0x101   : > { %p10_p4 = scmp.ge.s32.totalorder %s13_s12, 4  }
 0x103   :  { %12 = sbr.rel (!%p10_p4) target bundleno = 1 (0x1), region = 64 }

</bundles_post_ra>
